<compile_context>
chip_gen: v5e
topology: v5e:2x2
jax: 0.10.0
libtpu: 0.0.40
codegen_flags: <defaults>
</compile_context>

<pallas_src>
import functools
import math

import jax
import jax.numpy as jnp
from jax import lax
from jax.experimental import pallas as pl
from jax.experimental.pallas import tpu as pltpu

LANE = 128     # last-dim tiling unit
SUBLANE = 8    # second-to-last-dim tiling unit
_MIB = 1024 * 1024


def _round_up(n: int, m: int) -> int:
    return ((n + m - 1) // m) * m


def _cdiv(a: int, b: int) -> int:
    return (a + b - 1) // b


def _pad_to(a, target_shape):
    pads = [(0, t - s) for s, t in zip(a.shape, target_shape)]
    if any(hi for _, hi in pads):
        a = jnp.pad(a, pads)
    return a


def _vmem_budget_bytes() -> int:
    """Per-generation VMEM budget with headroom (v5e/v6e: 128 MiB, v7x: 64 MiB)."""
    try:
        cap = int(pltpu.get_tpu_info().vmem_capacity_bytes)
    except Exception:
        cap = 64 * _MIB   # conservative fallback (valid on every generation)
    return int(0.75 * cap)


def _gelu(h, approximate: bool):
    if approximate:
        # tanh form -> EUP slot (free under the matmuls)
        return jax.nn.gelu(h, approximate=True)
    # exact erf form: matches torch.nn.GELU() default
    return 0.5 * h * (1.0 + lax.erf(h * (1.0 / math.sqrt(2.0))))


def _mlp_resident_kernel(x_ref, w1_ref, b1_ref, w2_ref, b2_ref, o_ref, *,
                         approximate_gelu):
    """Weights fully resident in VMEM; one row tile per grid step."""
    h = jnp.dot(x_ref[...], w1_ref[...], preferred_element_type=jnp.float32)
    # GELU in f32, immediately downcast to the matmul operand dtype (fused).
    h = _gelu(h + b1_ref[...], approximate_gelu).astype(w2_ref.dtype)
    o = jnp.dot(h, w2_ref[...], preferred_element_type=jnp.float32) + b2_ref[...]
    o_ref[...] = o.astype(o_ref.dtype)
    # Dropout(p=0.0) -> identity (both dropouts in the module).


def _mlp_panel_kernel(x_ref, w1_ref, b1_ref, w2_ref, b2_ref, o_ref, acc_ref, *,
                      approximate_gelu):
    """H-panel streaming path: grid = (row_tiles, h_panels); fc2 accumulated."""
    j = pl.program_id(1)

    @pl.when(j == 0)
    def _():
        acc_ref[...] = jnp.zeros_like(acc_ref)

    h = jnp.dot(x_ref[...], w1_ref[...], preferred_element_type=jnp.float32)
    h = _gelu(h + b1_ref[...], approximate_gelu).astype(w2_ref.dtype)
    acc_ref[...] += jnp.dot(h, w2_ref[...], preferred_element_type=jnp.float32)

    @pl.when(j == pl.num_programs(1) - 1)
    def _():
        o_ref[...] = (acc_ref[...] + b2_ref[...]).astype(o_ref.dtype)


def mlp_pallas(x, w1, b1, w2, b2, *, tm=512, tile_h=None,
               compute_dtype=jnp.bfloat16, approximate_gelu=True):
    """Mlp forward: GELU(x @ w1 + b1) @ w2 + b2.

    x:  [..., C_in] (arbitrary leading dims; flattened to rows internally)
    w1: [C_in, H], b1: [H], w2: [H, C_out], b2: [C_out]
      (weights stored [in, out], i.e. transpose of torch nn.Linear .weight)
    compute_dtype: matmul operand dtype (default bf16; accumulation/GELU in f32)
    approximate_gelu: tanh GELU (default, fast); False -> exact erf (torch default)
    tile_h: optional explicit H-panel width (multiple of 128); None -> auto.

    Designed to be wrapped in jax.jit by the caller so the padding / dtype casts
    fuse with surrounding ops instead of being re-materialized per call.
    """
    orig_dtype = x.dtype
    lead = x.shape[:-1]
    C_in = x.shape[-1]
    H = w1.shape[1]
    C_out = w2.shape[1]
    assert w1.shape[0] == C_in and w2.shape[0] == H
    assert b1.shape == (H,) and b2.shape == (C_out,)

    M = math.prod(lead) if lead else 1
    x2 = x.reshape(M, C_in)

    cdt = jnp.dtype(compute_dtype)
    c_it = cdt.itemsize
    o_it = jnp.dtype(orig_dtype).itemsize

    # Lane-dense feature padding (exact, see header).
    Cin_p = _round_up(C_in, LANE)
    H_p = _round_up(H, LANE)
    Cout_p = _round_up(C_out, LANE)

    # ---- Row tiling: last tile nearly full; >= 2 parallel steps when possible
    # (v7x has 2 TensorCores; a grid of 1 leaves one idle). -------------------
    n_row = max(_cdiv(M, tm), 1)
    if n_row == 1 and M > SUBLANE:
        n_row = 2
    tm_eff = _round_up(_cdiv(M, n_row), SUBLANE)
    n_row = _cdiv(M, tm_eff)
    M_p = n_row * tm_eff

    # ---- VMEM footprint model (Pallas double-buffers every block by default) -
    def _footprint(th, tm_e):
        wgt = 2 * (Cin_p * th + th * Cout_p) * c_it + 2 * (th + Cout_p) * 4
        io = 2 * tm_e * (Cin_p * c_it + Cout_p * o_it)
        inter = tm_e * th * (4 + c_it)                  # f32 h + its cdt downcast
        acc = tm_e * Cout_p * 4 if th < H_p else 0      # fc2 accumulator scratch
        return wgt + io + inter + acc

    budget = _vmem_budget_bytes()

    # ---- H-panel selection ---------------------------------------------------
    if tile_h is not None:
        th = min(_round_up(tile_h, LANE), H_p)
        n_h = _cdiv(H_p, th)
        th = _round_up(_cdiv(H_p, n_h), LANE)
    else:
        n_h = 1
        th = H_p
        while _footprint(th, tm_eff) > budget and th > LANE:
            n_h += 1
            th = _round_up(_cdiv(H_p, n_h), LANE)
    H_pp = n_h * th

    # If even a single-LANE panel overflows the budget, shrink the row tile.
    while _footprint(th, tm_eff) > budget and tm_eff > SUBLANE:
        tm_eff = max(SUBLANE, _round_up(tm_eff // 2, SUBLANE))
        n_row = _cdiv(M, tm_eff)
        M_p = n_row * tm_eff

    # ---- Pad + cast operands (caller should jit this wrapper so it fuses) ----
    x_p = _pad_to(x2, (M_p, Cin_p)).astype(cdt)
    w1_p = _pad_to(w1, (Cin_p, H_pp)).astype(cdt)
    w2_p = _pad_to(w2, (H_pp, Cout_p)).astype(cdt)
    b1_p = _pad_to(b1.astype(jnp.float32).reshape(1, H), (1, H_pp))
    b2_p = _pad_to(b2.astype(jnp.float32).reshape(1, C_out), (1, Cout_p))

    fp = _footprint(th, tm_eff)
    vmem_limit = int(min(max(2 * fp, 32 * _MIB), budget))

    cost = pl.CostEstimate(
        flops=2 * M_p * (Cin_p * H_pp + H_pp * Cout_p),
        transcendentals=M_p * H_pp,
        bytes_accessed=(M_p * Cin_p * c_it
                        + (Cin_p * H_pp + H_pp * Cout_p) * c_it
                        + (H_pp + Cout_p) * 4
                        + M_p * Cout_p * o_it),
    )

    if n_h == 1:
        # Resident-weights path.
        kernel = functools.partial(_mlp_resident_kernel,
                                   approximate_gelu=approximate_gelu)
        grid = (n_row,)
        in_specs = [
            pl.BlockSpec((tm_eff, Cin_p), lambda i: (i, 0)),     # x rows
            pl.BlockSpec((Cin_p, H_pp), lambda i: (0, 0)),       # w1 (resident)
            pl.BlockSpec((1, H_pp), lambda i: (0, 0)),           # b1
            pl.BlockSpec((H_pp, Cout_p), lambda i: (0, 0)),      # w2 (resident)
            pl.BlockSpec((1, Cout_p), lambda i: (0, 0)),         # b2
        ]
        out_specs = pl.BlockSpec((tm_eff, Cout_p), lambda i: (i, 0))
        scratch_shapes = []
        dim_sem = ("parallel",)
    else:
        # H-panel streaming path (bounded VMEM footprint; needed for v7x).
        kernel = functools.partial(_mlp_panel_kernel,
                                   approximate_gelu=approximate_gelu)
        grid = (n_row, n_h)
        in_specs = [
            pl.BlockSpec((tm_eff, Cin_p), lambda i, j: (i, 0)),  # x rows (held)
            pl.BlockSpec((Cin_p, th), lambda i, j: (0, j)),      # w1 column panel
            pl.BlockSpec((1, th), lambda i, j: (0, j)),          # b1 panel
            pl.BlockSpec((th, Cout_p), lambda i, j: (j, 0)),     # w2 row panel
            pl.BlockSpec((1, Cout_p), lambda i, j: (0, 0)),      # b2
        ]
        out_specs = pl.BlockSpec((tm_eff, Cout_p), lambda i, j: (i, 0))
        scratch_shapes = [pltpu.VMEM((tm_eff, Cout_p), jnp.float32)]
        dim_sem = ("parallel", "arbitrary")

    out_p = pl.pallas_call(
        kernel,
        out_shape=jax.ShapeDtypeStruct((M_p, Cout_p), orig_dtype),
        grid_spec=pltpu.PrefetchScalarGridSpec(
            num_scalar_prefetch=0,
            grid=grid,
            in_specs=in_specs,
            out_specs=out_specs,
            scratch_shapes=scratch_shapes,
        ),
        compiler_params=pltpu.CompilerParams(
            dimension_semantics=dim_sem,
            vmem_limit_bytes=vmem_limit,
        ),
        cost_estimate=cost,
    )(x_p, w1_p, b1_p, w2_p, b2_p)

    return out_p[:M, :C_out].reshape(*lead, C_out)


def mlp_reference(x, w1, b1, w2, b2):
    h = x @ w1 + b1
    h = 0.5 * h * (1.0 + lax.erf(h * (1.0 / math.sqrt(2.0))))  # exact-erf GELU
    return h @ w2 + b2


def _uniform_linear_init(kw, kb, fan_in, fan_out):
    lim = 1.0 / math.sqrt(fan_in)
    w = jax.random.uniform(kw, (fan_in, fan_out), minval=-lim, maxval=lim,
                           dtype=jnp.float32)
    b = jax.random.uniform(kb, (fan_out,), minval=-lim, maxval=lim,
                           dtype=jnp.float32)
    return w, b


if __name__ == "__main__":
    # Shapes consistent with the module's forward:
    # tokens [B, N, C_in] -> Linear(C_in, H) -> GELU -> Linear(H, C_out)
    B, N = 2, 8
    in_features, hidden_features, out_features = 16, 32, 16

    key = jax.random.PRNGKey(0)
    kx, kw1, kb1, kw2, kb2, kw1b, kb1b, kw2b, kb2b = jax.random.split(key, 9)

    x = jax.random.normal(kx, (B, N, in_features), dtype=jnp.float32)

    # Deterministic init mimicking nn.Linear default (uniform +-1/sqrt(fan_in)).
    w1, b1 = _uniform_linear_init(kw1, kb1, in_features, hidden_features)
    w2, b2 = _uniform_linear_init(kw2, kb2, hidden_features, out_features)

    ref = mlp_reference(x, w1, b1, w2, b2)

    # 1) Default fast path: bf16 matmul operands + tanh GELU (recommended).
    fwd_fast = jax.jit(functools.partial(mlp_pallas, tm=512))
    out_fast = fwd_fast(x, w1, b1, w2, b2)
    jax.block_until_ready(out_fast)
    assert out_fast.shape == (B, N, out_features)
    assert jnp.allclose(out_fast, ref, atol=5e-2, rtol=5e-2), \
        "bf16/tanh-GELU path mismatch vs reference"

    # 2) Bit-faithful path: f32 operands + exact-erf GELU (torch.nn.GELU default).
    fwd_exact = jax.jit(functools.partial(
        mlp_pallas, tm=512, compute_dtype=jnp.float32, approximate_gelu=False))
    out_exact = fwd_exact(x, w1, b1, w2, b2)
    jax.block_until_ready(out_exact)
    assert jnp.allclose(out_exact, ref, atol=1e-4, rtol=1e-4), \
        "f32/erf path mismatch vs reference"

    # 3) H-panel streaming path (the bounded-VMEM path used when resident
    #    weights would overflow, e.g. on v7x), exercised at small shapes by
    #    forcing a 128-wide H panel on a hidden=256 MLP.
    hidden_big = 256
    w1b, b1b = _uniform_linear_init(kw1b, kb1b, in_features, hidden_big)
    w2b, b2b = _uniform_linear_init(kw2b, kb2b, hidden_big, out_features)
    refb = mlp_reference(x, w1b, b1b, w2b, b2b)
    fwd_panel = jax.jit(functools.partial(
        mlp_pallas, tm=512, tile_h=128,
        compute_dtype=jnp.float32, approximate_gelu=False))
    out_panel = fwd_panel(x, w1b, b1b, w2b, b2b)
    jax.block_until_ready(out_panel)
    assert jnp.allclose(out_panel, refb, atol=1e-4, rtol=1e-4), \
        "H-panel path mismatch vs reference"

    print("KERNEL_OK")
</pallas_src>

<mosaic_0001>
module attributes {stable_mosaic.version = 11 : i64} {
  func.func @_mlp_resident_kernel(%arg0: i32, %arg1: memref<8x128xbf16, #tpu.memory_space<vmem>>, %arg2: memref<128x128xbf16, #tpu.memory_space<vmem>>, %arg3: memref<1x128xf32, #tpu.memory_space<vmem>>, %arg4: memref<128x128xbf16, #tpu.memory_space<vmem>>, %arg5: memref<1x128xf32, #tpu.memory_space<vmem>>, %arg6: memref<8x128xf32, #tpu.memory_space<vmem>>) attributes {dimension_semantics = [#tpu.dimension_semantics<parallel>], iteration_bounds = array<i64: 2>, scalar_prefetch = 0 : i64, scratch_operands = 0 : i64, tpu.core_type = #tpu.core_type<tc>, window_params = [{transform_indices = @transform_0, window_bounds = array<i64: 8, 128>}, {pipeline_mode = #tpu.pipeline_mode<synchronous>, transform_indices = @transform_1, window_bounds = array<i64: 128, 128>}, {pipeline_mode = #tpu.pipeline_mode<synchronous>, transform_indices = @transform_2, window_bounds = array<i64: 1, 128>}, {pipeline_mode = #tpu.pipeline_mode<synchronous>, transform_indices = @transform_3, window_bounds = array<i64: 128, 128>}, {pipeline_mode = #tpu.pipeline_mode<synchronous>, transform_indices = @transform_4, window_bounds = array<i64: 1, 128>}, {transform_indices = @transform_5, window_bounds = array<i64: 8, 128>}]} {
    %c0 = arith.constant 0 : index
    %c0_0 = arith.constant 0 : index
    %0 = vector.load %arg1[%c0, %c0_0] : memref<8x128xbf16, #tpu.memory_space<vmem>>, vector<8x128xbf16>
    %c0_1 = arith.constant 0 : index
    %c0_2 = arith.constant 0 : index
    %1 = vector.load %arg2[%c0_1, %c0_2] : memref<128x128xbf16, #tpu.memory_space<vmem>>, vector<128x128xbf16>
    %cst = arith.constant dense<0.000000e+00> : vector<8x128xf32>
    %2 = tpu.matmul %0, %1, %cst {dimension_numbers = #tpu.dot_dimension_numbers<[1], [0], [0], [1], [0, 0, 1, 1], [], []>} : vector<8x128xbf16>, vector<128x128xbf16>, vector<8x128xf32> -> vector<8x128xf32>
    %c0_3 = arith.constant 0 : index
    %c0_4 = arith.constant 0 : index
    %3 = vector.load %arg3[%c0_3, %c0_4] : memref<1x128xf32, #tpu.memory_space<vmem>>, vector<1x128xf32>
    %4 = vector.broadcast %3 : vector<1x128xf32> to vector<8x128xf32>
    %5 = arith.addf %2, %4 : vector<8x128xf32>
    %6 = arith.mulf %5, %5 : vector<8x128xf32>
    %7 = arith.mulf %5, %6 : vector<8x128xf32>
    %cst_5 = arith.constant 4.471500e-02 : f32
    %8 = vector.broadcast %cst_5 : f32 to vector<8x128xf32>
    %9 = arith.mulf %8, %7 : vector<8x128xf32>
    %10 = arith.addf %5, %9 : vector<8x128xf32>
    %cst_6 = arith.constant 0.797884583 : f32
    %11 = vector.broadcast %cst_6 : f32 to vector<8x128xf32>
    %12 = arith.mulf %11, %10 : vector<8x128xf32>
    %13 = math.tanh %12 : vector<8x128xf32>
    %cst_7 = arith.constant 1.000000e+00 : f32
    %14 = vector.broadcast %cst_7 : f32 to vector<8x128xf32>
    %15 = arith.addf %14, %13 : vector<8x128xf32>
    %cst_8 = arith.constant 5.000000e-01 : f32
    %16 = vector.broadcast %cst_8 : f32 to vector<8x128xf32>
    %17 = arith.mulf %16, %15 : vector<8x128xf32>
    %18 = arith.mulf %5, %17 : vector<8x128xf32>
    %19 = arith.truncf %18 : vector<8x128xf32> to vector<8x128xbf16>
    %c0_9 = arith.constant 0 : index
    %c0_10 = arith.constant 0 : index
    %20 = vector.load %arg4[%c0_9, %c0_10] : memref<128x128xbf16, #tpu.memory_space<vmem>>, vector<128x128xbf16>
    %cst_11 = arith.constant dense<0.000000e+00> : vector<8x128xf32>
    %21 = tpu.matmul %19, %20, %cst_11 {dimension_numbers = #tpu.dot_dimension_numbers<[1], [0], [0], [1], [0, 0, 1, 1], [], []>} : vector<8x128xbf16>, vector<128x128xbf16>, vector<8x128xf32> -> vector<8x128xf32>
    %c0_12 = arith.constant 0 : index
    %c0_13 = arith.constant 0 : index
    %22 = vector.load %arg5[%c0_12, %c0_13] : memref<1x128xf32, #tpu.memory_space<vmem>>, vector<1x128xf32>
    %23 = vector.broadcast %22 : vector<1x128xf32> to vector<8x128xf32>
    %24 = arith.addf %21, %23 : vector<8x128xf32>
    %c0_14 = arith.constant 0 : index
    %c0_15 = arith.constant 0 : index
    %25 = vector.load %arg6[%c0_14, %c0_15] : memref<8x128xf32, #tpu.memory_space<vmem>>, vector<8x128xf32>
    tpu.vector_store %arg6[%c0_14, %c0_15], %24 {strides = array<i32>} : memref<8x128xf32, #tpu.memory_space<vmem>>, vector<8x128xf32>,
    return
  }
  func.func @transform_0(%arg0: i32) -> (i32, i32) {
    %c0_i32 = arith.constant 0 : i32
    %c0_i32_0 = arith.constant 0 : i32
    return %arg0, %c0_i32 : i32, i32
  }
  func.func @transform_1(%arg0: i32) -> (i32, i32) {
    %c0_i32 = arith.constant 0 : i32
    %c0_i32_0 = arith.constant 0 : i32
    %c0_i32_1 = arith.constant 0 : i32
    return %c0_i32, %c0_i32_0 : i32, i32
  }
  func.func @transform_2(%arg0: i32) -> (i32, i32) {
    %c0_i32 = arith.constant 0 : i32
    %c0_i32_0 = arith.constant 0 : i32
    %c0_i32_1 = arith.constant 0 : i32
    return %c0_i32, %c0_i32_0 : i32, i32
  }
  func.func @transform_3(%arg0: i32) -> (i32, i32) {
    %c0_i32 = arith.constant 0 : i32
    %c0_i32_0 = arith.constant 0 : i32
    %c0_i32_1 = arith.constant 0 : i32
    return %c0_i32, %c0_i32_0 : i32, i32
  }
  func.func @transform_4(%arg0: i32) -> (i32, i32) {
    %c0_i32 = arith.constant 0 : i32
    %c0_i32_0 = arith.constant 0 : i32
    %c0_i32_1 = arith.constant 0 : i32
    return %c0_i32, %c0_i32_0 : i32, i32
  }
  func.func @transform_5(%arg0: i32) -> (i32, i32) {
    %c0_i32 = arith.constant 0 : i32
    %c0_i32_0 = arith.constant 0 : i32
    return %arg0, %c0_i32 : i32, i32
  }
}

</mosaic_0001>

<bundles_post_ra>
// kernel: mlp_pallas.1
= control target key start
LH: loop header
LB: loop body
LE: loop exit
PB: predicated region body
PF: predicated region fallthrough
CT: control target
= control target key end

     0   :  { %s586_s18 = smov 0   ;;  %s661_s0 = inlined_call_operand.vmem [shape: bf16[16,128], index: 0, kind: input, shape index: {}]   ;;  %s662_s1 = inlined_call_operand.vmem [shape: bf16[128,128], index: 1, kind: input, shape index: {}]   ;;  %s663_s2 = inlined_call_operand.vmem [shape: f32[1,128], index: 2, kind: input, shape index: {}]   ;;  %s664_s3 = inlined_call_operand.vmem [shape: bf16[128,128], index: 3, kind: input, shape index: {}]   ;;  %s665_s4 = inlined_call_operand.vmem [shape: f32[1,128], index: 4, kind: input, shape index: {}]   ;;  %s666_s5 = inlined_call_operand.vmem [shape: f32[16,128], index: 5, kind: output, shape index: {}]  }
   0x1 LB: > { %s447_s19 = sadd.s32 4294967295, %s554_s18   ;;  %p451_p0 = scmp.ge.s32.totalorder %s554_s18, 1  ;;  %s554_s18 = sphi %s586_s18, %s15_s18  }
   0x2   : > { %p186_p1 = scmp.lt.s32.totalorder %s554_s18, 3 }
   0x4   : > { %p187_p2 = pnand %p451_p0, %p186_p1 }
   0x5   : > { %p212_p3 = scmp.lt.s32.totalorder (!%p187_p2), %s447_s19, 1 }
   0x6   : > { %190 = sbr.rel (%p187_p2) target bundleno = 330 (0x14a), region = 40 }
   0xb   : > { %v527_v0 = vld [vmem:[%s662_s1 + $0x38] sm:$0xff]  ;;  %v526_v1 = vld [vmem:[%s662_s1 + $0x30] sm:$0xff]  ;;  %v525_v3 = vld [vmem:[%s662_s1 + $0x28] sm:$0xff]  ;;  %s668_s19 = smov (!%p212_p3, %s447_s19), 1 }
   0xc   : > { %289 = vmatpush.bf16.msra.mxu0 %v527_v0  ;;  %v535_v2 = vld [vmem:[%s664_s3 + $0x38] sm:$0xff]  ;;  %v524_v4 = vld [vmem:[%s662_s1 + $0x20] sm:$0xff]  ;;  %v522_v6 = vld [vmem:[%s662_s1 + $0x10] sm:$0xff]  ;;  %s452_s11 = sshll.u32 %s668_s19, 2  ;;  %s453_s10 = sshll.u32 %s668_s19, 3 }
   0xd   : > { %380 = vmatpush.bf16.msra.mxu1 %v535_v2  ;;  %v523_v5 = vld [vmem:[%s662_s1 + $0x18] sm:$0xff]  ;;  %v521_v7 = vld [vmem:[%s662_s1 + $0x8] sm:$0xff]  ;;  %v520_v8 = vld [vmem:[%s662_s1] sm:$0xff]  ;;  %s215_s16 = scalar_lea.vmem %s661_s0, %s452_s11  ;;  %s219_s15 = scalar_lea.vmem %s666_s5, %s453_s10 }
   0xe   : > { %v220_v9 = vld [vmem:[%s215_s16] sm:$0xf]  ;;  %v534_v10 = vld [vmem:[%s664_s3 + $0x30] sm:$0xff]  ;;  %v533_v11 = vld [vmem:[%s664_s3 + $0x28] sm:$0xff] }
   0xf   : > { %v532_v12 = vld [vmem:[%s664_s3 + $0x20] sm:$0xff]  ;;  %v531_v13 = vld [vmem:[%s664_s3 + $0x18] sm:$0xff]  ;;  %v530_v14 = vld [vmem:[%s664_s3 + $0x10] sm:$0xff] }
  0x10   : > { %290 = vmatpush.bf16.msra.mxu0 %v526_v1  ;;  %v529_v15 = vld [vmem:[%s664_s3 + $0x8] sm:$0xff]  ;;  %v528_v16 = vld [vmem:[%s664_s3] sm:$0xff] }
  0x11   : > { %381 = vmatpush.bf16.msra.mxu1 %v534_v10  ;;  %v544_v17 = vld [vmem:[%s663_s2] ss:$0 sm:$0xff] }
  0x12   : > { %v545_v31 = vld [vmem:[%s665_s4] ss:$0 sm:$0xff] }
  0x14   : > { %291 = vmatpush.bf16.msra.mxu0 %v525_v3 }
  0x15   : > { %382 = vmatpush.bf16.msra.mxu1 %v533_v11 }
  0x18   : > { %292 = vmatpush.bf16.msra.mxu0 %v524_v4 }
  0x19   : > { %383 = vmatpush.bf16.msra.mxu1 %v532_v12 }
  0x1c   : > { %293 = vmatpush.bf16.msra.mxu0 %v523_v5 }
  0x1d   : > { %384 = vmatpush.bf16.msra.mxu1 %v531_v13 }
  0x20   : > { %294 = vmatpush.bf16.msra.mxu0 %v522_v6 }
  0x21   : > { %385 = vmatpush.bf16.msra.mxu1 %v530_v14 }
  0x24   : > { %295 = vmatpush.bf16.msra.mxu0 %v521_v7 }
  0x25   : > { %386 = vmatpush.bf16.msra.mxu1 %v529_v15 }
  0x28   : > { %296 = vmatpush.bf16.msra.mxu0 %v520_v8 }
  0x29   : > { %387 = vmatpush.bf16.msra.mxu1 %v528_v16 }
  0x2b   : > { %297 = vmatmul.bf16.vlgmr.msra.gmra.mxu0 %v220_v9 }
  0xa8   : > { %v298_v18 = vpop.f32.mrf.mxu0 }
  0xa9   : > { %v299_v19 = vadd.f32 %v544_v17, %v298_v18 }
  0xab   : > { %v302_v20 = vmul.f32 %v299_v19, %v299_v19 }
  0xad   : > { %v303_v21 = vmul.f32 %v302_v20, %v299_v19 }
  0xaf   : > { %v304_v22 = vmul.f32 0.044715, %v303_v21 }
  0xb0   : > { %v300_v23 = vpop.f32.mrf.mxu0 }
  0xb1   : > { %v305_v24 = vadd.f32 %v304_v22, %v299_v19 }
  0xb3   : > { %v306_v25 = vmul.f32 0.7978846, %v305_v24 }
  0xb5   : > { %546 = vtanh.f32 %v306_v25 }
  0xbb   : > { %v547_v26 = vpop.eup %546 }
  0xbc   : > { %v308_v27 = vadd.f32 1.0, %v547_v26 }
  0xbe   : > { %v309_v28 = vmul.f32 0.5, %v308_v27 }
  0xc0   : > { %v310_v29 = vmul.f32 %v309_v28, %v299_v19 }
  0xc2   : > { %v311_v30 = vpack.c.bf16 %v310_v29, %v310_v29 }
  0xc4   : > { %388 = vmatmul.bf16.vlgmr.msra.gmra.mxu1 %v311_v30 }
 0x141   : > { %v389_v32 = vpop.f32.mrf.mxu1 }
 0x142   : > { %v390_v33 = vadd.f32 %v545_v31, %v389_v32 }
 0x144   : > { %393 = vst [vmem:[%s219_s15] sm:$0xff] %v390_v33 }
 0x149   : > { %v391_v34 = vpop.f32.mrf.mxu1 }
 0x14a PF: > { %s15_s18 = sadd.s32 1, %s554_s18  }
 0x14b   : > { %p12_p4 = scmp.ge.s32.totalorder %s15_s18, 4  }
 0x14d   :  { %14 = sbr.rel (!%p12_p4) target bundleno = 1 (0x1), region = 70 }

</bundles_post_ra>
